<compile_context>
chip_gen: v6e
topology: v6e:2x2x1
jax: 0.10.0
libtpu: 0.0.40
codegen_flags: <defaults>
</compile_context>

<pallas_src>
import jax
import jax.numpy as jnp
from jax.experimental import pallas as pl
from jax.experimental.pallas import tpu as pltpu


# ----------------------------- Pallas kernels ------------------------------ #
def _mm_kernel_single_k(t_ref, x_ref, o_ref):
    """Single K-step tile: o = T_tile @ x_tile, no accumulator state at all."""
    o_ref[...] = jnp.dot(
        t_ref[...],
        x_ref[...].astype(t_ref.dtype),
        preferred_element_type=jnp.float32,
    ).astype(o_ref.dtype)


def _mm_kernel_accum_into_out(t_ref, x_ref, o_ref):
    """Multi K-step tile with f32 output: accumulate directly into o_ref.

    o_ref's block index is constant along the K grid axis, so the block stays
    resident in VMEM across the reduction; writing the first partial product
    and adding the rest avoids a separate f32 scratch, the zeros init and the
    finalize copy of the classic accumulator pattern.
    """
    k = pl.program_id(3)
    prod = jnp.dot(
        t_ref[...],
        x_ref[...].astype(t_ref.dtype),
        preferred_element_type=jnp.float32,
    )

    @pl.when(k == 0)
    def _first():
        o_ref[...] = prod

    @pl.when(k > 0)
    def _rest():
        o_ref[...] += prod


def _mm_kernel_scratch_acc(t_ref, x_ref, o_ref, acc_ref):
    """Multi K-step tile with non-f32 output: classic f32 scratch accumulator."""
    k = pl.program_id(3)

    @pl.when(k == 0)
    def _init():
        acc_ref[...] = jnp.zeros_like(acc_ref)

    acc_ref[...] += jnp.dot(
        t_ref[...],
        x_ref[...].astype(t_ref.dtype),
        preferred_element_type=jnp.float32,
    )

    @pl.when(k == pl.num_programs(3) - 1)
    def _finalize():
        o_ref[...] = acc_ref[...].astype(o_ref.dtype)


# ------------------------------ tiling helpers ------------------------------ #
def _round_up(v, m):
    return ((v + m - 1) // m) * m


def _pick_tile(dim, cap, aligns):
    """Largest tile <= cap dividing `dim`, preferring coarser alignments.

    Returns `dim` when dim <= cap (full-extent blocks are always legal) and
    None when no aligned divisor exists (caller zero-pads instead).
    """
    if dim <= cap:
        return dim
    for a in aligns:
        t = (cap // a) * a
        while t >= a:
            if dim % t == 0:
                return t
            t -= a
    return None


def _toeplitz_batched_matmul(t_mat, x, *, tm_cap=512, tk_cap=256, te_cap=1024,
                             compute_dtype=jnp.bfloat16):
    """out[b] = t_mat @ x[b], tiled over (batch, M, E, K) for the MXU."""
    b, n, e = x.shape
    assert t_mat.shape == (n, n)
    out_dtype = x.dtype

    # Tile selection: prefer 256-multiples (v6e/v7x 256x256 MXU); tm min-align 16
    # for bf16 sublane packing; te/tk min-align 128 (lane dim).
    tm = _pick_tile(n, tm_cap, (256, 128, 16))
    tk = _pick_tile(n, tk_cap, (256, 128))
    te = _pick_tile(e, te_cap, (256, 128))
    n_pad, e_pad = n, e
    if tm is None or tk is None:            # ragged n: zero-pad to a 256-multiple
        n_pad = _round_up(n, 256)
        tm = _pick_tile(n_pad, tm_cap, (256,))
        tk = _pick_tile(n_pad, tk_cap, (256,))
    if te is None:                          # ragged e: zero-pad to a 256-multiple
        e_pad = _round_up(e, 256)
        te = _pick_tile(e_pad, te_cap, (256,))

    # Zero-padding is exact: padded T rows/cols and padded x rows/cols only
    # contribute zeros to the contraction; padded output rows/cols are sliced off.
    if n_pad != n:
        t_mat = jnp.pad(t_mat, ((0, n_pad - n), (0, n_pad - n)))
        x = jnp.pad(x, ((0, 0), (0, n_pad - n), (0, 0)))
    if e_pad != e:
        x = jnp.pad(x, ((0, 0), (0, 0), (0, e_pad - e)))

    m_steps, e_steps, k_steps = n_pad // tm, e_pad // te, n_pad // tk
    grid = (b, m_steps, e_steps, k_steps)   # batch/M/E parallel, K (reduction) last

    t_c = t_mat.astype(compute_dtype)
    # Pre-cast x only when its blocks are re-streamed from HBM (M-steps > 1):
    # halves x HBM traffic (big win on bandwidth-limited v5e).  Otherwise keep
    # the cast inside the kernel so there is no extra XLA pass over x.
    if m_steps > 1 and x.dtype != compute_dtype:
        x = x.astype(compute_dtype)

    if k_steps == 1:
        kernel, scratch = _mm_kernel_single_k, []
    elif out_dtype == jnp.float32:
        kernel, scratch = _mm_kernel_accum_into_out, []
    else:
        kernel, scratch = _mm_kernel_scratch_acc, [pltpu.VMEM((tm, te), jnp.float32)]

    out_bytes = b * n_pad * e_pad * out_dtype.itemsize
    cost = pl.CostEstimate(
        flops=2 * b * n_pad * n_pad * e_pad,
        transcendentals=0,
        bytes_accessed=(t_c.size * t_c.dtype.itemsize
                        + x.size * x.dtype.itemsize + out_bytes),
    )

    out = pl.pallas_call(
        kernel,
        out_shape=jax.ShapeDtypeStruct((b, n_pad, e_pad), out_dtype),
        grid_spec=pltpu.PrefetchScalarGridSpec(
            num_scalar_prefetch=0,
            grid=grid,
            in_specs=[
                # T block depends only on (m, k); bf16, reused by every (batch, E) tile.
                pl.BlockSpec((tm, tk), lambda bi, mi, ei, ki: (mi, ki)),
                # Batch dim squeezed -> 2-D kernel refs, lane-dense last dims.
                pl.BlockSpec((pl.Squeezed(), tk, te),
                             lambda bi, mi, ei, ki: (bi, ki, ei)),
            ],
            out_specs=pl.BlockSpec((pl.Squeezed(), tm, te),
                                   lambda bi, mi, ei, ki: (bi, mi, ei)),
            scratch_shapes=scratch,
        ),
        compiler_params=pltpu.CompilerParams(
            dimension_semantics=("parallel", "parallel", "parallel", "arbitrary"),
            vmem_limit_bytes=32 * 1024 * 1024,
        ),
        cost_estimate=cost,
    )(t_c, x)

    if n_pad != n or e_pad != e:
        out = out[:, :n, :e]
    return out


def toeplitz_forward_pallas(t_mat, x):
    """out[b] = T @ x[b] for x of shape (b, n, e) — module forward semantics."""
    return _toeplitz_batched_matmul(t_mat, x)


# --------------------------- parameter / glue code -------------------------- #
def init_toeplizt_params(n, type_num=1, causal=False):
    """Deterministic parameter init mirroring Toeplizt.__init__ (no checkpoint)."""
    if type_num == -1:
        pos = jnp.ones((n - 1,), jnp.float32)
        zero = jnp.ones((1,), jnp.float32)
        neg = (jnp.zeros((n - 1,), jnp.float32) if causal
               else jnp.ones((n - 1,), jnp.float32))
    elif type_num == 1:
        vec = jnp.clip(-jnp.ones((n - 1,), jnp.float32), -60.0, 30.0)
        pos = jnp.exp(vec)
        zero = jnp.ones((1,), jnp.float32)
        vec2 = jnp.clip(-jnp.arange(n, 0, -1).astype(jnp.float32), -60.0, 30.0)
        # NOTE: for type_num=1 non-causal, `neg` has length n (as in PyTorch);
        # everywhere downstream only neg[-(n-1):] is used.
        neg = (jnp.zeros((n - 1,), jnp.float32) if causal
               else jnp.exp(vec2))
    else:
        raise ValueError("type_num must be -1 or 1")
    return zero, pos, neg


def build_toeplitz_matrix(zero, pos, neg, n):
    """Same construction as Toeplizt.toeplizt_matrix(n)."""
    c = jnp.concatenate([zero, pos[: n - 1]])              # first column
    r = jnp.concatenate([zero, neg[-(n - 1):][::-1]])      # first row
    vals = jnp.concatenate([r, c[1:][::-1]])               # length 2n-1
    i = jnp.arange(n)[:, None]
    j = jnp.arange(n)[None, :]
    idx = jnp.mod(j - i, 2 * n - 1)                        # torch negative indexing
    return vals[idx]                                       # (n, n)


def toeplizt_forward_reference(x, zero, pos, neg):
    """Direct port of Toeplizt.forward via FFT (pure JAX), for verification."""
    b, n, e = x.shape
    a = jnp.concatenate([zero, pos[: n - 1], zero, neg[-(n - 1):]])
    y = jnp.fft.fft(x, 2 * n, axis=1, norm="ortho")
    v = jnp.fft.fft(a)[None, :, None]
    u = v * y
    out = jnp.fft.ifft(u, n=2 * n, axis=1, norm="ortho")[:, :n, :].real
    return out.astype(x.dtype)


# ---------------------------------- main ------------------------------------ #
if __name__ == "__main__":
    key = jax.random.PRNGKey(0)

    def run_case(b, n, e, case_key):
        zero, pos, neg = init_toeplizt_params(n, type_num=1, causal=False)
        t_mat = build_toeplitz_matrix(zero, pos, neg, n)
        x = jax.random.normal(case_key, (b, n, e), dtype=jnp.float32)

        out = jax.block_until_ready(toeplitz_forward_pallas(t_mat, x))
        assert out.shape == (b, n, e)

        # (1) Tight check against a matmul reference using the same bf16 MXU inputs
        #     (validates the kernel computes exactly the intended contraction).
        ref_mm = jnp.einsum(
            "ij,bje->bie",
            t_mat.astype(jnp.bfloat16),
            x.astype(jnp.bfloat16),
            preferred_element_type=jnp.float32,
        ).astype(x.dtype)
        assert jnp.allclose(out, ref_mm, atol=2e-3, rtol=2e-3)

        # (2) Semantic check against the module's FFT-based f32 forward; normalized
        #     tolerance because the MXU path feeds bf16 inputs.
        ref_fft = toeplizt_forward_reference(x, zero, pos, neg)
        rel = jnp.max(jnp.abs(out - ref_fft)) / jnp.maximum(
            jnp.max(jnp.abs(ref_fft)), 1.0)
        assert float(rel) < 1e-2, float(rel)

    k1, k2, k3 = jax.random.split(key, 3)
    run_case(2, 16, 128, k1)     # tiny n: single K step, grid (b,1,1,1) (batch parallel)
    run_case(2, 128, 256, k2)    # medium: single K step, full-n blocks
    run_case(2, 1024, 256, k3)   # large n: multi-M, multi-K, x pre-cast to bf16,
                                 # accumulate-into-output kernel

    print("KERNEL_OK")
</pallas_src>

<mosaic_0001>
module attributes {stable_mosaic.version = 11 : i64} {
  func.func @_mm_kernel_single_k(%arg0: i32, %arg1: i32, %arg2: i32, %arg3: i32, %arg4: memref<16x16xbf16, #tpu.memory_space<vmem>>, %arg5: memref<1x16x128xf32, #tpu.memory_space<vmem>>, %arg6: memref<1x16x128xf32, #tpu.memory_space<vmem>>) attributes {dimension_semantics = [#tpu.dimension_semantics<parallel>, #tpu.dimension_semantics<parallel>, #tpu.dimension_semantics<parallel>, #tpu.dimension_semantics<arbitrary>], iteration_bounds = array<i64: 2, 1, 1, 1>, scalar_prefetch = 0 : i64, scratch_operands = 0 : i64, tpu.core_type = #tpu.core_type<tc>, window_params = [{transform_indices = @transform_0, window_bounds = array<i64: 16, 16>}, {transform_indices = @transform_1, window_bounds = array<i64: 1, 16, 128>}, {transform_indices = @transform_2, window_bounds = array<i64: 1, 16, 128>}]} {
    %c0 = arith.constant 0 : index
    %c0_0 = arith.constant 0 : index
    %0 = vector.load %arg4[%c0, %c0_0] : memref<16x16xbf16, #tpu.memory_space<vmem>>, vector<16x16xbf16>
    %c0_1 = arith.constant 0 : index
    %c0_2 = arith.constant 0 : index
    %c0_3 = arith.constant 0 : index
    %1 = vector.load %arg5[%c0_1, %c0_2, %c0_3] : memref<1x16x128xf32, #tpu.memory_space<vmem>>, vector<1x16x128xf32>
    %2 = vector.shape_cast %1 : vector<1x16x128xf32> to vector<16x128xf32>
    %3 = arith.truncf %2 : vector<16x128xf32> to vector<16x128xbf16>
    %cst = arith.constant dense<0.000000e+00> : vector<16x128xf32>
    %4 = tpu.matmul %0, %3, %cst {dimension_numbers = #tpu.dot_dimension_numbers<[1], [0], [0], [1], [0, 0, 1, 1], [], []>} : vector<16x16xbf16>, vector<16x128xbf16>, vector<16x128xf32> -> vector<16x128xf32>
    %c0_4 = arith.constant 0 : index
    %c0_5 = arith.constant 0 : index
    %c0_6 = arith.constant 0 : index
    %5 = vector.load %arg6[%c0_4, %c0_5, %c0_6] : memref<1x16x128xf32, #tpu.memory_space<vmem>>, vector<1x16x128xf32>
    %6 = vector.shape_cast %5 : vector<1x16x128xf32> to vector<16x128xf32>
    %7 = vector.shape_cast %4 : vector<16x128xf32> to vector<1x16x128xf32>
    tpu.vector_store %arg6[%c0_4, %c0_5, %c0_6], %7 {strides = array<i32>} : memref<1x16x128xf32, #tpu.memory_space<vmem>>, vector<1x16x128xf32>,
    return
  }
  func.func @transform_0(%arg0: i32, %arg1: i32, %arg2: i32, %arg3: i32) -> (i32, i32) {
    %c0_i32 = arith.constant 0 : i32
    return %arg1, %arg3 : i32, i32
  }
  func.func @transform_1(%arg0: i32, %arg1: i32, %arg2: i32, %arg3: i32) -> (i32, i32, i32) {
    %c0_i32 = arith.constant 0 : i32
    return %arg0, %arg3, %arg2 : i32, i32, i32
  }
  func.func @transform_2(%arg0: i32, %arg1: i32, %arg2: i32, %arg3: i32) -> (i32, i32, i32) {
    %c0_i32 = arith.constant 0 : i32
    return %arg0, %arg1, %arg2 : i32, i32, i32
  }
}

</mosaic_0001>

<bundles_post_ra>
// kernel: tpu_custom_call.1
= control target key start
LH: loop header
LB: loop body
LE: loop exit
PB: predicated region body
PF: predicated region fallthrough
CT: control target
= control target key end

     0   :  { %7 = vsyncpa [#allocation3], 0  ;;  %s872_s0 = inlined_call_operand.hbm [shape: bf16[16,16], index: 0, kind: input, shape index: {}]   ;;  %s873_s1 = inlined_call_operand.hbm [shape: f32[2,16,128], index: 1, kind: input, shape index: {}]   ;;  %s874_s2 = inlined_call_operand.hbm [shape: f32[2,16,128], index: 2, kind: output, shape index: {}]  }
   0x1   :  { %8 = vsyncpa [#allocation6], 0 }
   0x2   :  { %10 = vsyncpa [#allocation6 + $0x1], 0 }
   0x3   :  { %11 = vsyncpa [#allocation4], 0 }
   0x4   :  { %13 = vsyncpa [#allocation4 + $0x1], 0  ;;  %s691_s9 = smov 0   ;;  %s693_s10 = smov 0  }
   0x5   :  { %s695_s11 = smov 0   ;;  %s697_s12 = smov 0  }
   0x6   :  { %s699_s13 = smov 0   ;;  %s701_s14 = smov 0  }
   0x7 LB: > { %s414_s15 = sadd.s32 4294967295, %s663_s14   ;;  %s415_s16 = sadd.s32 4294967294, %s663_s14   ;;  %s663_s14 = sphi %s701_s14, %s19_s14   ;;  %s659_s13 = sphi %s699_s13, %s892_s13   ;;  %s655_s12 = sphi %s697_s12, %s891_s12   ;;  %s651_s11 = sphi %s695_s11, %s890_s11   ;;  %s647_s10 = sphi %s693_s10, %s889_s10   ;;  %s643_s9 = sphi %s691_s9, %s888_s9  }
   0x8   : > { %p97_p0 = scmp.ne.s32.totalorder %s647_s10, %s643_s9  ;;  %p725_p1 = scmp.eq.s32.totalorder %s414_s15, 0 }
   0x9   : > { %p729_p2 = scmp.eq.s32.totalorder %s414_s15, 1  ;;  %p131_p3 = scmp.eq.s32.totalorder %s415_s16, 1 }
   0xa   : > { %p735_p4 = por %p725_p1, %p97_p0  ;;  %p416_p5 = scmp.ge.s32.totalorder %s663_s14, 1 }
   0xb   : > { %p740_p6 = por %p131_p3, %p97_p0  ;;  %p138_p7 = scmp.lt.s32.totalorder %s663_s14, 3 }
   0xc   : > { %s878_s19 = scalar_select %p735_p4, 1, 0 }
   0xd   : > { %s879_s20 = scalar_select %p740_p6, 1, 0 }
   0xe   : > { %p745_p8 = pnand %p416_p5, %p138_p7  ;;  %s665_s22 = smov [#allocation2]  }
   0xf   : > { %s154_s23 = sshll.u32 %s665_s22, 4  ;;  %s45_s25 = sadd.s32 1, %s659_s13  ;;  %s155_s23 = int_to_ptr.vmem [resolvable:$true] %s154_s23 }
  0x10   : > { %p451_p9 = pneg %p745_p8  ;;  %s536_s26 = scalar_lea.vmem %s155_s23, 128 }
  0x11   : > { %p537_p13 = scmp.ne.s32.totalorder %s155_s23, %s536_s26  ;;  %p544_p5 = scmp.lt.s32.totalorder %s155_s23, %s155_s23 }
  0x12   : > { %p754_p11 = pnand %p451_p9, %p725_p1  ;;  %p545_p7 = scmp.lt.s32.totalorder %s536_s26, %s536_s26 }
  0x14   : > { %p527_p12 = pneg %p754_p11  ;;  %p546_p6 = por %p545_p7, %p544_p5 }
  0x16   : > { %p539_p0 = pnand %p537_p13, %p527_p12 }
  0x18   : > { %p540_p3 = pneg %p539_p0 }
  0x1a   : > { %p547_p4 = pnand %p546_p6, %p540_p3 }
  0x1c   : > { %550 = shalt.err (!%p547_p4)
}
  0x1d   : > { %s666_s27 = smov 64   ;;  %s667_s28 = smov 4  }
  0x1e   : > { %454 = dma.hbm_to_vmem [thread:$0]  (!%p754_p11), %s872_s0, 128, %s155_s23, [#allocation3], %s666_s27, %s666_s27, %s667_s28  }
  0x1f   : > { %p47_p6 = scmp.ge.s32.totalorder %s45_s25, 2  ;;  %s84_s3 = sadd.s32 1, %s651_s11 }
  0x20   : > { %p91_p4 = scmp.ne.s32.totalorder %s651_s11, %s647_s10  ;;  %p92_p9 = scmp.eq.s32.totalorder %s663_s14, 0 }
  0x21   : > { %s894_s25 = smov (%p47_p6, %s45_s25), 0  ;;  %p464_p0 = scmp.lt.s32.totalorder %s663_s14, 2 }
  0x22   : > { %p772_p12 = por %p92_p9, %p91_p4  ;;  %p778_p13 = por %p729_p2, %p91_p4 }
  0x23   : > { %s77_s6 = ssub.s32 %s659_s13, %s894_s25  ;;  %s168_s7 = sand.u32 1, %s651_s11  }
  0x24   : > { %p82_p11 = scmp.eq.s32.totalorder %s77_s6, 0  ;;  %s419_s8 = sshll.u32 %s168_s7, 4 }
  0x25   : > { %s433_s16 = sshll.u32 %s659_s13, 8  ;;  %s172_s26 = scalar_lea.vmem [#allocation5], %s419_s8 }
  0x26   : > { %s787_s15 = scalar_select %p82_p11, %s651_s11, %s84_s3  }
  0x27   : > { %s181_s24 = scalar_lea.hbm %s873_s1, %s433_s16  ;;  %s182_s27 = sshll.u32 %s172_s26, 4  ;;  %s183_s27 = int_to_ptr.vmem [resolvable:$true] %s182_s27 }
  0x28   : > { %p795_p2 = pnand %p464_p0, %p772_p12  ;;  %s169_s28 = scalar_lea.sflag [#allocation6], %s168_s7 }
  0x29   : > { %s564_s29 = scalar_lea.vmem %s183_s27, 256  ;;  %s668_s30 = smov [#allocation5]  }
  0x2a   : > { %p553_p3 = pneg %p795_p2  ;;  %p565_p5 = scmp.ne.s32.totalorder %s183_s27, %s564_s29 }
  0x2b   : > { %s569_s3 = sshll.u32 %s668_s30, 4  ;;  %s570_s3 = int_to_ptr.vmem [resolvable:$false] %s569_s3 }
  0x2c   : > { %p567_p7 = pnand %p565_p5, %p553_p3  ;;  %s571_s6 = scalar_lea.vmem %s570_s3, 512 }
  0x2d   : > { %p572_p4 = scmp.lt.s32.totalorder %s183_s27, %s570_s3  ;;  %p573_p9 = scmp.lt.s32.totalorder %s571_s6, %s564_s29 }
  0x2e   : > { %p568_p6 = pneg %p567_p7 }
  0x2f   : > { %p574_p11 = por %p573_p9, %p572_p4 }
  0x31   : > { %p575_p10 = pnand %p574_p11, %p568_p6 }
  0x33   : > { %578 = shalt.err (!%p575_p10)
}
  0x34   : > { %s669_s4 = smov 128   ;;  %s670_s8 = smov 8  }
  0x35   : > { %458 = dma.hbm_to_vmem [thread:$0]  (!%p795_p2), %s181_s24, 256, %s183_s27, %s169_s28, %s669_s4, %s669_s4, %s670_s8  }
  0x36   : > { %194 = sbr.rel (%p745_p8) target bundleno = 282 (0x11a), region = 28 }
  0x3b   : > { %630 = dma.done.wait (%p725_p1), [#allocation3], 128  }
  0x3c   : > { %632 = vsyncadd (%p725_p1), [#allocation3], 4294967168  ;;  %s810_s7 = sand.u32 1, %s647_s10   ;;  %p885_p10 = scmp.ne.s32.totalorder %s878_s19, 0 }
  0x3d   : > { %s424_s16 = sshll.u32 %s810_s7, 4  ;;  %s201_s22 = scalar_lea.sflag [#allocation6], %s810_s7 }
  0x3e   : > { %s204_s23 = scalar_lea.vmem [#allocation5], %s424_s16 }
  0x3f   : > { %634 = dma.done.wait (%p885_p10), %s201_s22, 256  }
  0x40   : > { %636 = vsyncadd (%p885_p10), %s201_s22, 4294967040  ;;  %v671_v0 = vmov 0.0   ;;  %vm672_vm0 = vmmov 0   ;;  %v231_v1 = vld [vmem:[%s204_s23] sm:$0xff]  ;;  %v232_v2 = vld [vmem:[%s204_s23 + $0x8] sm:$0xff]  ;;  %vm239_vm1 = vcmask 130048  }
  0x41   : > { %437 = vmatprep.subr.bf16.mxu0 %v671_v0  ;;  %439 = vmatprep.mubr.msk.bf16.mxu0 %vm672_vm0, %v671_v0  ;;  %v233_v3 = vpack.c.bf16 %v232_v2, %v231_v1  ;;  %v524_v4 = vld [vmem:[#allocation2] sm:$0xff]   ;;  %s224_s17 = scalar_lea.vmem [#allocation7], %s424_s16  ;;  %s434_s24 = sshll.u32 %s655_s12, 8 }
  0x42   : > { %s303_s21 = sshll.u32 %s224_s17, 4  ;;  %s824_s27 = scalar_lea.hbm %s874_s2, %s434_s24  ;;  %s819_s21 = int_to_ptr.vmem [resolvable:$true] %s303_s21 }
  0x43   : > { %438 = vmatpush3.bf16.msra.mxu0 %v233_v3  ;;  %s287_s18 = scalar_lea.sflag [#allocation4], %s810_s7  ;;  %s579_s28 = scalar_lea.vmem %s819_s21, 256 }
  0x44   : > { %p580_p1 = scmp.ne.s32.totalorder %s819_s21, %s579_s28  ;;  %s673_s12 = smov [#allocation7]  }
  0x45   : > { %s583_s29 = sshll.u32 %s673_s12, 4  ;;  %s584_s29 = int_to_ptr.vmem [resolvable:$false] %s583_s29 }
  0x46   : > { %440 = vmatmul.mubr.msk.bf16.vlgmr.msra.gmra.mxu0 %vm239_vm1, %v524_v4  ;;  %p581_p8 = pnand %p580_p1, %p778_p13  ;;  %s585_s30 = scalar_lea.vmem %s584_s29, 512 }
  0x47   : > { %p586_p0 = scmp.lt.s32.totalorder %s819_s21, %s584_s29  ;;  %p587_p2 = scmp.lt.s32.totalorder %s585_s30, %s579_s28 }
  0x48   : > { %p582_p12 = pneg %p581_p8 }
  0x49   : > { %p588_p3 = por %p587_p2, %p586_p0 }
  0x4b   : > { %p589_p5 = pnand %p588_p3, %p582_p12 }
 0x106   : > { %v277_v5 = vpop.f32.mrf.mxu0 }
 0x107   : > { %284 = vst [vmem:[%s224_s17] sm:$0xff] %v277_v5 }
 0x108   : > { %v441_v6 = vpop.f32.mrf.mxu0 }
 0x10a   : > { %v280_v7 = vpop.f32.mrf.mxu0 }
 0x10b   : > { %285 = vst [vmem:[%s224_s17 + $0x8] sm:$0xff] %v280_v7 }
 0x10c   : > { %v442_v8 = vpop.f32.mrf.mxu0 }
 0x10d   : > { %592 = shalt.err (!%p589_p5)
}
 0x10e   : > { %s593_s3 = scalar_lea.hbm %s824_s27, 256  ;;  %s597_s8 = scalar_lea.hbm %s874_s2, 512 }
 0x10f   : > { %p594_p7 = scmp.ne.s32.totalorder %s824_s27, %s593_s3  ;;  %p598_p9 = scmp.lt.s32.totalorder %s824_s27, %s874_s2 }
 0x110   : > { %p599_p11 = scmp.lt.s32.totalorder %s597_s8, %s593_s3 }
 0x111   : > { %p595_p6 = pnand %p594_p7, %p778_p13 }
 0x112   : > { %p600_p10 = por %p599_p11, %p598_p9 }
 0x113   : > { %p596_p4 = pneg %p595_p6 }
 0x115   : > { %p601_p1 = pnand %p600_p10, %p596_p4 }
 0x117   : > { %604 = shalt.err (!%p601_p1)
}
 0x118   : > { %s674_s23 = smov 128   ;;  %s675_s17 = smov 8  }
 0x119   : > { %449 = dma.vmem_to_hbm [thread:$0]  (%p778_p13), %s819_s21, 256, %s824_s27, %s287_s18, %s674_s23, %s674_s23, %s675_s17  }
 0x11a PF: > { %s318_s24 = sand.u32 1, %s643_s9   ;;  %p886_p8 = scmp.ne.s32.totalorder %s879_s20, 0 }
 0x11b   : > { %p887_p12 = scmp.ge.s32.totalorder %s663_s14, 2  ;;  %s319_s19 = scalar_lea.sflag [#allocation4], %s318_s24 }
 0x11d   : > { %p460_p0 = pnand %p887_p12, %p886_p8 }
 0x11f   : > { %p461_p2 = pneg %p460_p0 }
 0x121   : > { %638 = dma.done.wait (%p461_p2), %s319_s19, 256  }
 0x122   : > { %640 = vsyncadd (%p461_p2), %s319_s19, 4294967040  ;;  %s19_s14 = sadd.s32 1, %s663_s14   ;;  %s888_s9 = smov %s647_s10 }
 0x123   : > { %p16_p3 = scmp.ge.s32.totalorder %s19_s14, 4   ;;  %s889_s10 = smov %s651_s11 }
 0x124   : > { %s890_s11 = smov %s787_s15  ;;  %s891_s12 = smov %s659_s13 }
 0x125   : > { %s892_s13 = smov %s894_s25  ;;  %18 = sbr.rel (!%p16_p3) target bundleno = 7 (0x7), region = 79 }
 0x12a   :  { %324 = vsyncpa [#allocation3], 1 }
 0x12b   :  { %326 = vsyncpa [#allocation3 + $0x1], 1 }
 0x12c   :  { %327 = vsyncpa [#allocation6], 1 }
 0x12d   :  { %329 = vsyncpa [#allocation6 + $0x1], 1 }
 0x12e   :  { %330 = vsyncpa [#allocation4], 1 }
 0x12f   :  { %332 = vsyncpa [#allocation4 + $0x1], 1 }

</bundles_post_ra>
